<compile_context>
chip_gen: v7x
topology: tpu7x:2x2x1
jax: 0.10.0
libtpu: 0.0.40
codegen_flags: <defaults>
</compile_context>

<pallas_src>
import functools

import jax
import jax.numpy as jnp
from jax import lax
from jax.experimental import pallas as pl
from jax.experimental.pallas import tpu as pltpu


def _dsn_kernel(q_ref, b_ref, o_ref, *, e_blk, way, k, inv_scale, unroll):
    # q_ref : (e_blk, Q, D)  query features (bf16 or f32)
    # b_ref : (e_blk, M, D)  flattened orthonormal bases, M = pad(way * (shot - 1))
    # o_ref : (e_blk, Q, W)  logits = -(||q||^2 - sum_k coeff^2) * inv_scale
    m_pad = b_ref.shape[1]
    d_pad = q_ref.shape[2]

    # Compile-time-constant operands, hoisted out of the episode loop.
    # sel[i, w] = inv_scale iff basis row i belongs to class w; zero-padded basis rows
    # map to no class.  Built in-kernel so there is no third DMA stream.
    row = lax.broadcasted_iota(jnp.int32, (m_pad, way), 0)
    col = lax.broadcasted_iota(jnp.int32, (m_pad, way), 1)
    sel = jnp.where((row >= col * k) & (row < (col + 1) * k),
                    jnp.float32(inv_scale), jnp.float32(0.0))          # (M, W)
    qnorm_w = jnp.full((d_pad, way), inv_scale, dtype=jnp.float32)     # (D, W)

    def episode(ei):
        Qe = q_ref[ei]                                                 # (Q, D)
        Be = b_ref[ei]                                                 # (M, D)
        # subspace coordinates: one (Q,D)x(D,M) MXU matmul, f32 accumulation
        coeff = lax.dot_general(Qe, Be, (((1,), (1,)), ((), ())),
                                preferred_element_type=jnp.float32)    # (Q, M)
        # per-class projection energy and ||q||^2 both as MXU contractions over the
        # feature/basis axis (keeps XLU/VPU slots free); inv_scale folded into operands.
        energy = jnp.dot(coeff * coeff, sel,
                         preferred_element_type=jnp.float32)           # (Q, W)
        Qf = Qe.astype(jnp.float32)                                    # upcast only for square
        qsq = jnp.dot(Qf * Qf, qnorm_w,
                      preferred_element_type=jnp.float32)              # (Q, W)
        o_ref[ei] = (energy - qsq).astype(o_ref.dtype)

    if unroll:
        # small block: static unroll keeps full LLO scheduler visibility
        for ei in range(e_blk):
            episode(ei)
    else:
        # large block: fori_loop bounds vreg live ranges (only 64 vregs)
        def body(ei, carry):
            episode(ei)
            return carry
        lax.fori_loop(0, e_blk, body, 0)


def _pad_to(x, axis, mult):
    pad = (-x.shape[axis]) % mult
    if pad == 0:
        return x
    widths = [(0, 0)] * x.ndim
    widths[axis] = (0, pad)
    return jnp.pad(x, widths)


def _vmem_plan():
    # Generation-aware VMEM sizing: v5e/v6e report 128 MiB physical, v7x 64 MiB.
    try:
        cap = int(pltpu.get_tpu_info().vmem_capacity_bytes)
    except Exception:
        cap = 64 * 1024 * 1024                    # conservative fallback (v7x size)
    vmem_limit = max(16 << 20, min(int(cap * 0.6), 64 << 20))
    budget = int(vmem_limit * 0.75)               # target for double-buffered block bytes
    return vmem_limit, budget


def _pick_blocks(e, q_pad, d_pad, m_pad, way, itemsize, sub, budget_bytes):
    def block_bytes(e_blk, q_blk):
        # inputs and outputs are double-buffered by the BlockSpec pipeline
        return 2 * e_blk * ((q_blk + m_pad) * d_pad * itemsize + q_blk * way * 4)

    e_blk = int(max(1, min(e, budget_bytes // max(block_bytes(1, q_pad), 1))))
    # keep >=2 grid steps (4 when there are enough episodes) so both v7x TensorCores
    # get work; the extra ~0.35us/step is negligible on single-TC v5e/v6e.
    if e >= 2:
        min_steps = 4 if e >= 8 else 2
        e_blk = min(e_blk, max(1, e // min_steps))
    while e % e_blk:
        e_blk -= 1

    q_blk = q_pad
    # split q only when the episode axis alone cannot feed >=2 grid steps, or a single
    # episode block does not fit the VMEM budget
    if (e // e_blk) < 2 or block_bytes(e_blk, q_blk) > budget_bytes:
        for s in (8, 4, 2):
            if q_pad % (s * sub) == 0 and block_bytes(e_blk, q_pad // s) <= budget_bytes:
                q_blk = q_pad // s
                break
    return e_blk, q_blk, block_bytes(e_blk, q_blk)


def dsn_layer(query_feat, support_feat, way_num, shot_num, normalize=True,
              discriminative=False, compute_dtype=jnp.bfloat16, max_unroll=8):
    """DSN metric layer.  compute_dtype=bf16 halves HBM traffic (f32 accumulation on the
    MXU) at a small accuracy cost; pass jnp.float32 for bit-closer-to-PyTorch numerics."""
    e, ws, d = support_feat.shape
    assert ws == way_num * shot_num
    assert shot_num >= 2, "DSN needs shot_num >= 2 (subspace dim = shot_num - 1)"
    q = query_feat.shape[1]
    k = shot_num - 1
    m = way_num * k

    sup = support_feat.reshape(e, way_num, shot_num, d).astype(jnp.float32)
    # TODO(synk): PyTorch runs this SVD in float64; there is no Pallas SVD primitive and JAX
    # on TPU is f32 by default, so it stays in plain-JAX f32 (the projector is basis/sign
    # invariant, so results match up to fp error).
    UU, _, _ = jnp.linalg.svd(jnp.transpose(sup, (0, 1, 3, 2)), full_matrices=False)
    subspace = jnp.transpose(UU[:, :, :, :k], (0, 1, 3, 2))          # (e, way, k, d) f32
    basis_flat = subspace.reshape(e, m, d)                           # (e, way*k, d)  f32

    itemsize = jnp.dtype(compute_dtype).itemsize
    sub = 16 if itemsize == 2 else 8

    # Alignment padding (zero rows/columns do not change distances).  No-op when already
    # aligned; when misaligned it costs one extra pass over the padded stream in XLA,
    # which typically fuses with the producer.
    qf = _pad_to(_pad_to(query_feat.astype(compute_dtype), 2, 128), 1, sub)
    bf = _pad_to(_pad_to(basis_flat.astype(compute_dtype), 2, 128), 1, sub)
    q_pad, d_pad = qf.shape[1], qf.shape[2]
    m_pad = bf.shape[1]

    inv_scale = (1.0 / d) if normalize else 1.0

    vmem_limit, budget = _vmem_plan()
    e_blk, q_blk, block_bytes = _pick_blocks(e, q_pad, d_pad, m_pad, way_num,
                                             itemsize, sub, budget)
    vmem_limit = int(max(vmem_limit, block_bytes + (4 << 20)))

    unroll = e_blk <= max_unroll
    kernel = functools.partial(_dsn_kernel, e_blk=e_blk, way=way_num, k=k,
                               inv_scale=float(inv_scale), unroll=unroll)

    flops = 2 * e * q_pad * d_pad * m_pad + 2 * e * q_pad * way_num * (m_pad + d_pad)
    bytes_accessed = e * (q_pad + m_pad) * d_pad * itemsize + e * q_pad * way_num * 4
    cost = pl.CostEstimate(flops=int(flops), transcendentals=0,
                           bytes_accessed=int(bytes_accessed))

    logits = pl.pallas_call(
        kernel,
        out_shape=jax.ShapeDtypeStruct((e, q_pad, way_num), jnp.float32),
        grid_spec=pltpu.PrefetchScalarGridSpec(
            num_scalar_prefetch=0,
            grid=(e // e_blk, q_pad // q_blk),
            in_specs=[
                pl.BlockSpec((e_blk, q_blk, d_pad), lambda i, j: (i, j, 0)),
                pl.BlockSpec((e_blk, m_pad, d_pad), lambda i, j: (i, 0, 0)),
            ],
            out_specs=pl.BlockSpec((e_blk, q_blk, way_num), lambda i, j: (i, j, 0)),
        ),
        compiler_params=pltpu.CompilerParams(
            dimension_semantics=("parallel", "parallel"),
            vmem_limit_bytes=vmem_limit,
        ),
        cost_estimate=cost,
    )(qf, bf)

    if q_pad != q:
        logits = logits[:, :q, :]

    disc_loss = jnp.float32(0.0)
    if discriminative:
        # ||S_a S_b^T||_F^2 summed over off-diagonal class pairs (cold path, plain JAX).
        cross = jnp.einsum('ewkd,evld->ewvkl', subspace, subspace)
        sq = jnp.sum(cross ** 2, axis=(-2, -1))                      # (e, way, way)
        off_diag = ~jnp.eye(way_num, dtype=bool)
        disc_loss = jnp.sum(jnp.where(off_diag[None], sq, 0.0))
    return logits, disc_loss


def _reference(query_feat, support_feat, way_num, shot_num, normalize=True):
    # pure-JAX reference mirroring the PyTorch forward (explicit projection + residual)
    e, ws, d = support_feat.shape
    sup = support_feat.reshape(e, way_num, shot_num, d)
    UU, _, _ = jnp.linalg.svd(jnp.transpose(sup, (0, 1, 3, 2)), full_matrices=False)
    subspace = jnp.transpose(UU[:, :, :, :shot_num - 1], (0, 1, 3, 2))   # (e, way, k, d)
    qf = query_feat[:, None, :, :]                                       # (e, 1, q, d)
    coeff = jnp.einsum('ewkd,euqd->ewqk', subspace, qf)                  # (e, way, q, k)
    proj = jnp.einsum('ewqk,ewkd->ewqd', coeff, subspace)                # (e, way, q, d)
    dist = jnp.sum((qf - proj) ** 2, axis=-1)                            # (e, way, q)
    logits = -jnp.transpose(dist, (0, 2, 1))                             # (e, q, way)
    if normalize:
        logits = logits / d
    return logits


if __name__ == "__main__":
    def run_case(e, way, shot, d, q, compute_dtype, max_unroll=8, atol=1e-3, rtol=1e-3,
                 discriminative=False):
        key = jax.random.PRNGKey(0)
        k1, k2 = jax.random.split(key)
        query = jax.random.normal(k1, (e, q, d), dtype=jnp.float32)
        support = jax.random.normal(k2, (e, way * shot, d), dtype=jnp.float32)
        logits, disc = dsn_layer(query, support, way, shot, normalize=True,
                                 discriminative=discriminative,
                                 compute_dtype=compute_dtype, max_unroll=max_unroll)
        logits = jax.block_until_ready(logits)
        ref = _reference(query, support, way, shot, normalize=True)
        assert logits.shape == (e, q, way), logits.shape
        assert bool(jnp.all(jnp.isfinite(logits)))
        assert jnp.allclose(logits, ref, atol=atol, rtol=rtol), (
            "max abs diff = %f" % float(jnp.max(jnp.abs(logits - ref))))
        if discriminative:
            disc = jax.block_until_ready(disc)
            assert bool(jnp.isfinite(disc))

    # f32 path, tight tolerance (matches the PyTorch forward up to SVD precision)
    run_case(e=2, way=4, shot=3, d=32, q=8, compute_dtype=jnp.float32,
             atol=1e-3, rtol=1e-3, discriminative=True)
    # bf16 fast path (default): flagged accuracy/tolerance tradeoff from the perf review
    run_case(e=2, way=4, shot=3, d=32, q=8, compute_dtype=jnp.bfloat16,
             atol=5e-2, rtol=5e-2)
    # e == 1: exercises the extra "parallel" q-axis grid split (keeps both v7x TCs busy)
    run_case(e=1, way=5, shot=2, d=32, q=32, compute_dtype=jnp.float32,
             atol=1e-3, rtol=1e-3)
    # larger episode block with a small unroll cap: exercises the fori_loop episode loop
    run_case(e=16, way=4, shot=3, d=32, q=8, compute_dtype=jnp.float32,
             max_unroll=2, atol=1e-3, rtol=1e-3)

    print("KERNEL_OK")
</pallas_src>

<mosaic_0001>
module attributes {stable_mosaic.version = 11 : i64} {
  func.func @_dsn_kernel(%arg0: i32, %arg1: i32, %arg2: memref<1x8x128xf32, #tpu.memory_space<vmem>>, %arg3: memref<1x8x128xf32, #tpu.memory_space<vmem>>, %arg4: memref<1x8x4xf32, #tpu.memory_space<vmem>>) attributes {dimension_semantics = [#tpu.dimension_semantics<parallel>, #tpu.dimension_semantics<parallel>], iteration_bounds = array<i64: 2, 1>, scalar_prefetch = 0 : i64, scratch_operands = 0 : i64, tpu.core_type = #tpu.core_type<tc>, window_params = [{transform_indices = @transform_0, window_bounds = array<i64: 1, 8, 128>}, {transform_indices = @transform_1, window_bounds = array<i64: 1, 8, 128>}, {transform_indices = @transform_2, window_bounds = array<i64: 1, 8, 4>}]} {
    %0 = tpu.iota {dimensions = array<i32: 0>} : vector<8x4xi32>
    %1 = tpu.iota {dimensions = array<i32: 1>} : vector<8x4xi32>
    %c2_i32 = arith.constant 2 : i32
    %2 = vector.broadcast %c2_i32 : i32 to vector<8x4xi32>
    %3 = arith.muli %1, %2 : vector<8x4xi32>
    %4 = arith.cmpi sge, %0, %3 : vector<8x4xi32>
    %c1_i32 = arith.constant 1 : i32
    %5 = vector.broadcast %c1_i32 : i32 to vector<8x4xi32>
    %6 = arith.addi %1, %5 : vector<8x4xi32>
    %c2_i32_0 = arith.constant 2 : i32
    %7 = vector.broadcast %c2_i32_0 : i32 to vector<8x4xi32>
    %8 = arith.muli %6, %7 : vector<8x4xi32>
    %9 = arith.cmpi slt, %0, %8 : vector<8x4xi32>
    %10 = arith.andi %4, %9 : vector<8x4xi1>
    %cst = arith.constant 3.125000e-02 : f32
    %cst_1 = arith.constant 0.000000e+00 : f32
    %11 = vector.broadcast %cst : f32 to vector<8x4xf32>
    %12 = vector.broadcast %cst_1 : f32 to vector<8x4xf32>
    %13 = arith.select %10, %11, %12 : vector<8x4xi1>, vector<8x4xf32>
    %cst_2 = arith.constant 3.125000e-02 : f32
    %14 = vector.broadcast %cst_2 : f32 to vector<128x4xf32>
    %c0 = arith.constant 0 : index
    %c0_3 = arith.constant 0 : index
    %c0_4 = arith.constant 0 : index
    %15 = vector.load %arg2[%c0, %c0_3, %c0_4] : memref<1x8x128xf32, #tpu.memory_space<vmem>>, vector<1x8x128xf32>
    %16 = vector.shape_cast %15 : vector<1x8x128xf32> to vector<8x128xf32>
    %c0_5 = arith.constant 0 : index
    %c0_6 = arith.constant 0 : index
    %c0_7 = arith.constant 0 : index
    %17 = vector.load %arg3[%c0_5, %c0_6, %c0_7] : memref<1x8x128xf32, #tpu.memory_space<vmem>>, vector<1x8x128xf32>
    %18 = vector.shape_cast %17 : vector<1x8x128xf32> to vector<8x128xf32>
    %cst_8 = arith.constant dense<0.000000e+00> : vector<8x8xf32>
    %19 = tpu.matmul %16, %18, %cst_8 {dimension_numbers = #tpu.dot_dimension_numbers<[1], [1], [0], [0], [0, 0, 1, 0], [], []>} : vector<8x128xf32>, vector<8x128xf32>, vector<8x8xf32> -> vector<8x8xf32>
    %20 = arith.mulf %19, %19 : vector<8x8xf32>
    %cst_9 = arith.constant dense<0.000000e+00> : vector<8x4xf32>
    %21 = tpu.matmul %20, %13, %cst_9 {dimension_numbers = #tpu.dot_dimension_numbers<[1], [0], [0], [1], [0, 0, 1, 1], [], []>} : vector<8x8xf32>, vector<8x4xf32>, vector<8x4xf32> -> vector<8x4xf32>
    %22 = arith.mulf %16, %16 : vector<8x128xf32>
    %cst_10 = arith.constant dense<0.000000e+00> : vector<8x4xf32>
    %23 = tpu.matmul %22, %14, %cst_10 {dimension_numbers = #tpu.dot_dimension_numbers<[1], [0], [0], [1], [0, 0, 1, 1], [], []>} : vector<8x128xf32>, vector<128x4xf32>, vector<8x4xf32> -> vector<8x4xf32>
    %24 = arith.subf %21, %23 : vector<8x4xf32>
    %c0_11 = arith.constant 0 : index
    %c0_12 = arith.constant 0 : index
    %c0_13 = arith.constant 0 : index
    %25 = vector.load %arg4[%c0_11, %c0_12, %c0_13] : memref<1x8x4xf32, #tpu.memory_space<vmem>>, vector<1x8x4xf32>
    %26 = vector.shape_cast %25 : vector<1x8x4xf32> to vector<8x4xf32>
    %27 = vector.shape_cast %24 : vector<8x4xf32> to vector<1x8x4xf32>
    tpu.vector_store %arg4[%c0_11, %c0_12, %c0_13], %27 {strides = array<i32>} : memref<1x8x4xf32, #tpu.memory_space<vmem>>, vector<1x8x4xf32>,
    return
  }
  func.func @transform_0(%arg0: i32, %arg1: i32) -> (i32, i32, i32) {
    %c0_i32 = arith.constant 0 : i32
    %c0_i32_0 = arith.constant 0 : i32
    return %arg0, %arg1, %c0_i32 : i32, i32, i32
  }
  func.func @transform_1(%arg0: i32, %arg1: i32) -> (i32, i32, i32) {
    %c0_i32 = arith.constant 0 : i32
    %c0_i32_0 = arith.constant 0 : i32
    %c0_i32_1 = arith.constant 0 : i32
    return %arg0, %c0_i32, %c0_i32_0 : i32, i32, i32
  }
  func.func @transform_2(%arg0: i32, %arg1: i32) -> (i32, i32, i32) {
    %c0_i32 = arith.constant 0 : i32
    %c0_i32_0 = arith.constant 0 : i32
    return %arg0, %arg1, %c0_i32 : i32, i32, i32
  }
}

</mosaic_0001>

<bundles_post_ra>
// kernel: tpu_custom_call.1
= control target key start
LH: loop header
LB: loop body
LE: loop exit
PB: predicated region body
PF: predicated region fallthrough
CT: control target
= control target key end

     0   :  { %7 = vsyncpa [#allocation3], 0  ;;  %s1034_s0 = inlined_call_operand.hbm [shape: f32[2,8,128], index: 0, kind: input, shape index: {}]   ;;  %s1035_s1 = inlined_call_operand.hbm [shape: f32[2,8,128], index: 1, kind: input, shape index: {}]   ;;  %s1036_s2 = inlined_call_operand.vmem [shape: f32[2,8,4], index: 2, kind: output, shape index: {}]  }
   0x1   :  { %9 = vsyncpa [#allocation3 + $0x1], 0 }
   0x2   :  { %10 = vsyncpa [#allocation5], 0 }
   0x3   :  { %12 = vsyncpa [#allocation5 + $0x1], 0  ;;  %s859_s9 = smov 0   ;;  %s861_s10 = smov 0  }
   0x4   :  { %s863_s11 = smov 0   ;;  %s865_s12 = smov 0  }
   0x5   :  { %s867_s13 = smov 0   ;;  %s869_s14 = smov 0  }
   0x6 LB: > { %s558_s15 = sadd.s32 4294967295, %s835_s14   ;;  %s30_s16 = sadd.s32 1, %s831_s13  ;;  %s835_s14 = sphi %s869_s14, %s18_s14   ;;  %s831_s13 = sphi %s867_s13, %s1050_s13   ;;  %s827_s12 = sphi %s865_s12, %s1049_s12   ;;  %s823_s11 = sphi %s863_s11, %s1048_s11   ;;  %s819_s10 = sphi %s861_s10, %s1047_s10   ;;  %s815_s9 = sphi %s859_s9, %s1046_s9  }
   0x7   : > { %p32_p0 = scmp.ge.s32.totalorder %s30_s16, 2  ;;  %s39_s17 = sadd.s32 1, %s823_s11 }
   0x8   : > { %p46_p1 = scmp.ne.s32.totalorder %s823_s11, %s819_s10  ;;  %p47_p2 = scmp.eq.s32.totalorder %s835_s14, 0 }
   0x9   : > { %s1052_s16 = smov (%p32_p0, %s30_s16), 0  ;;  %p52_p4 = scmp.ne.s32.totalorder %s819_s10, %s815_s9 }
   0xa   : > { %p895_p3 = por %p47_p2, %p46_p1  ;;  %s34_s19 = ssub.s32 %s831_s13, %s1052_s16 }
   0xb   : > { %p53_p5 = scmp.eq.s32.totalorder %s558_s15, 0  ;;  %p37_p6 = scmp.eq.s32.totalorder %s34_s19, 0 }
   0xc   : > { %p667_p8 = scmp.lt.s32.totalorder %s835_s14, 2  ;;  %s911_s22 = sand.u32 1, %s823_s11  }
   0xd   : > { %p902_p7 = por %p53_p5, %p52_p4  ;;  %s563_s23 = sshll.u32 %s831_s13, 7 }
   0xe   : > { %s908_s21 = scalar_select %p37_p6, %s823_s11, %s39_s17  }
   0xf   : > { %s1039_s20 = scalar_select %p902_p7, 1, 0 }
  0x10   : > { %s562_s24 = sshll.u32 %s911_s22, 3  ;;  %s920_s27 = scalar_lea.hbm %s1034_s0, %s563_s23 }
  0x11   : > { %s134_s28 = scalar_lea.vmem [#allocation2], %s562_s24  ;;  %p926_p9 = pnand %p667_p8, %p895_p3 }
  0x12   : > { %s142_s29 = sshll.u32 %s134_s28, 4  ;;  %s131_s3 = scalar_lea.sflag [#allocation3], %s911_s22  ;;  %s930_s29 = int_to_ptr.vmem [resolvable:$true] %s142_s29 }
  0x13   : > { %s721_s4 = scalar_lea.hbm %s920_s27, 128  ;;  %p723_p13 = pneg %p926_p9 }
  0x14   : > { %p722_p12 = scmp.ne.s32.totalorder %s920_s27, %s721_s4  ;;  %s726_s7 = scalar_lea.hbm %s1034_s0, 256 }
  0x15   : > { %p727_p2 = scmp.lt.u32.totalorder %s920_s27, %s1034_s0  ;;  %p728_p3 = scmp.lt.u32.totalorder %s726_s7, %s721_s4 }
  0x16   : > { %p724_p0 = pnand %p723_p13, %p722_p12  ;;  %p730_p5 = scmp.lt.u32.totalorder %s721_s4, %s920_s27 }
  0x17   : > { %p729_p4 = por %p728_p3, %p727_p2 }
  0x18   : > { %p725_p1 = pneg %p724_p0 }
  0x19   : > { %p731_p6 = por %p730_p5, %p729_p4 }
  0x1b   : > { %p732_p8 = pnand %p731_p6, %p725_p1 }
  0x1d   : > { %735 = shalt.err (!%p732_p8)
}
  0x1e   : > { %s736_s15 = scalar_lea.vmem %s930_s29, 128  ;;  %s837_s17 = smov [#allocation2]  }
  0x1f   : > { %p737_p12 = scmp.ne.s32.totalorder %s930_s29, %s736_s15  ;;  %s741_s18 = sshll.u32 %s837_s17, 4  ;;  %s742_s18 = int_to_ptr.vmem [resolvable:$false] %s741_s18 }
  0x20   : > { %s743_s19 = scalar_lea.vmem %s742_s18, 256  ;;  %p744_p11 = scmp.lt.s32.totalorder %s930_s29, %s742_s18 }
  0x21   : > { %p739_p0 = pnand %p737_p12, %p723_p13  ;;  %p745_p2 = scmp.lt.s32.totalorder %s743_s19, %s736_s15 }
  0x23   : > { %p740_p10 = pneg %p739_p0  ;;  %p746_p3 = por %p745_p2, %p744_p11 }
  0x25   : > { %p747_p4 = pnand %p746_p3, %p740_p10 }
  0x27   : > { %750 = shalt.err (!%p747_p4)
}
  0x28   : > { %663 = dma.hbm_to_vmem [thread:$0]  (!%p926_p9), %s920_s27, 128, %s930_s29, %s131_s3  }
  0x29   : > { %p1041_p1 = scmp.lt.s32.totalorder %s835_s14, 3  ;;  %p1042_p5 = scmp.ge.s32.totalorder %s835_s14, 1 }
  0x2a   : > { %s973_s4 = scalar_lea.hbm %s1035_s1, %s563_s23  ;;  %s153_s5 = scalar_lea.vmem [#allocation4], %s562_s24 }
  0x2b   : > { %p964_p6 = pnand %p1042_p5, %p1041_p1  ;;  %s160_s6 = sshll.u32 %s153_s5, 4  ;;  %s161_s6 = int_to_ptr.vmem [resolvable:$true] %s160_s6 }
  0x2c   : > { %s150_s27 = scalar_lea.sflag [#allocation5], %s911_s22  ;;  %s751_s29 = scalar_lea.hbm %s973_s4, 128 }
  0x2d   : > { %s1043_s25 = scalar_select %p964_p6, 1, 0 }
  0x2e   : > { %p752_p10 = scmp.ne.s32.totalorder %s973_s4, %s751_s29  ;;  %s756_s23 = scalar_lea.hbm %s1035_s1, 256 }
  0x2f   : > { %p757_p12 = scmp.lt.u32.totalorder %s973_s4, %s1035_s1  ;;  %p758_p0 = scmp.lt.u32.totalorder %s756_s23, %s751_s29 }
  0x30   : > { %p754_p11 = pnand %p752_p10, %p723_p13  ;;  %p760_p3 = scmp.lt.u32.totalorder %s751_s29, %s973_s4 }
  0x31   : > { %p759_p2 = por %p758_p0, %p757_p12 }
  0x32   : > { %p755_p8 = pneg %p754_p11 }
  0x33   : > { %p761_p4 = por %p760_p3, %p759_p2 }
  0x35   : > { %p762_p1 = pnand %p761_p4, %p755_p8 }
  0x37   : > { %765 = shalt.err (!%p762_p1)
}
  0x38   : > { %s766_s22 = scalar_lea.vmem %s161_s6, 128  ;;  %s838_s24 = smov [#allocation4]  }
  0x39   : > { %p767_p5 = scmp.ne.s32.totalorder %s161_s6, %s766_s22  ;;  %s771_s15 = sshll.u32 %s838_s24, 4  ;;  %s772_s15 = int_to_ptr.vmem [resolvable:$false] %s771_s15 }
  0x3a   : > { %s773_s17 = scalar_lea.vmem %s772_s15, 256  ;;  %p774_p7 = scmp.lt.s32.totalorder %s161_s6, %s772_s15 }
  0x3b   : > { %p769_p10 = pnand %p767_p5, %p723_p13  ;;  %p775_p6 = scmp.lt.s32.totalorder %s773_s17, %s766_s22 }
  0x3d   : > { %p770_p11 = pneg %p769_p10  ;;  %p776_p0 = por %p775_p6, %p774_p7 }
  0x3f   : > { %p777_p12 = pnand %p776_p0, %p770_p11 }
  0x41   : > { %780 = shalt.err (!%p777_p12)
}
  0x42   : > { %666 = dma.hbm_to_vmem [thread:$0]  (!%p926_p9), %s973_s4, 128, %s161_s6, %s150_s27  }
  0x43   : > { %p1044_p8 = scmp.ne.s32.totalorder %s1043_s25, 0 }
  0x44   : > { %s171_s18 = sand.u32 (!%p1044_p8), 1, %s819_s10   ;;  %p1045_p13 = scmp.ne.s32.totalorder (!%p1044_p8), %s1039_s20, 0 }
  0x45   : > { %169 = sbr.rel (%p1044_p8) target bundleno = 514 (0x202), region = 28  ;;  %s567_s19 = sshll.u32 (!%p1044_p8), %s171_s18, 3 }
  0x46   : > { %s172_s26 = scalar_lea.sflag (!%p1044_p8), [#allocation3], %s171_s18  ;;  %s175_s28 = scalar_lea.vmem (!%p1044_p8), [#allocation2], %s567_s19 }
  0x4c   : > { %806 = dma.done.wait (%p1045_p13), %s172_s26, 128  }
  0x4d   : > { %808 = vsyncadd (%p1045_p13), %s172_s26, 4294967168  ;;  %s181_s5 = scalar_lea.sflag [#allocation5], %s171_s18  ;;  %s184_s29 = scalar_lea.vmem [#allocation4], %s567_s19 }
  0x4e   : > { %810 = dma.done.wait (%p1045_p13), %s181_s5, 128  }
  0x4f   : > { %812 = vsyncadd (%p1045_p13), %s181_s5, 4294967168  ;;  %v839_v0 = vmov 0.0   ;;  %vm840_vm0 = vmmov 0   ;;  %v219_v1 = vlaneseq  ;;  %v841_v2 = vmov 0.0|0.0   ;;  %v231_v8 = vld [vmem:[%s184_s29] sm:$0xff]  ;;  %v230_v10 = vld [vmem:[%s175_s28] sm:$0xff] }
  0x50   : > { %595 = vmatprep.subr.mxu0 %v839_v0  ;;  %597 = vmatprep.mubr.msk.f32.mxu0 %vm840_vm0, %v839_v0  ;;  %v842_v3 = vmov 0.03125|0.03125   ;;  %v843_v11 = vmov 0.03125   ;;  %v377_v12 = vmul.f32 %v230_v10, %v230_v10  ;;  %vm303_vm4 = vcmask 64512   ;;  %p212_p7 = scmp.lt.s32.totalorder %s827_s12, 1 }
  0x51   : > { %640 = vmatprep.subr.bf16.mxu1 %v841_v2  ;;  %637 = vmatprep.mubr.msk.f32.mxu1 %vm840_vm0, %v839_v0  ;;  %v220_v4 = vshrl.u32 %v219_v1, 7  ;;  %v222_v5 = vand.u32 127, %v219_v1  ;;  %vm449_vm5 = vcmask 31744  }
  0x52   : > { %641 = vmatpush3.bf16.msra.mxu1 %v842_v3  ;;  %596 = vmatpush3.xpose.msra.mxu0 %v231_v8  ;;  %s1054_s12 = smov (!%p212_p7, %s827_s12), 1 }
  0x53   : > { %642 = vmatprep.subr.bf16.mxu1 %v841_v2  ;;  %v223_v6 = vmul.u32 2, %v222_v5  ;;  %v225_v7 = vadd.s32 1, %v222_v5  ;;  %600 = vmatprep.subr.mxu0 %v839_v0  ;;  %s569_s20 = sshll.u32 %s1054_s12, 3 }
  0x54   : > { %s218_s4 = scalar_lea.vmem %s1036_s2, %s569_s20 }
  0x55   : > { %vm224_vm1 = vcmp.ge.s32.totalorder %v220_v4, %v223_v6  ;;  %v226_v9 = vmul.u32 2, %v225_v7  ;;  %598 = vmatmul.mubr.f32.vlgmr.msra.gmra.mrb[0].mxu0 %v230_v10 }
  0x56   : > { %643 = vmatpush3.bf16.msra.mxu1 %v842_v3  ;;  %602 = vmatprep.mubr.msk.f32.mxu0 %vm840_vm0, %v839_v0 }
  0x57   : > { %644 = vmatprep.subr.bf16.mxu1 %v841_v2  ;;  %vm227_vm2 = vcmp.lt.s32.totalorder %v220_v4, %v226_v9 }
  0x58   : > { %vm228_vm3 = vmand %vm224_vm1, %vm227_vm2 }
  0x59   : > { %601 = vmatpush3.msk.msra.mxu0 %vm228_vm3, %v843_v11 }
  0x5a   : > { %645 = vmatpush3.bf16.msra.mxu1 %v842_v3 }
  0x5b   : > { %646 = vmatprep.subr.bf16.mxu1 %v841_v2 }
  0x5e   : > { %647 = vmatpush3.bf16.msra.mxu1 %v842_v3 }
  0x5f   : > { %648 = vmatprep.subr.bf16.mxu1 %v841_v2 }
  0x62   : > { %649 = vmatpush3.bf16.msra.mxu1 %v842_v3 }
  0x63   : > { %650 = vmatprep.subr.bf16.mxu1 %v841_v2 }
  0x66   : > { %651 = vmatpush3.bf16.msra.mxu1 %v842_v3 }
  0x67   : > { %652 = vmatprep.subr.bf16.mxu1 %v841_v2 }
  0x6a   : > { %653 = vmatpush3.bf16.msra.mxu1 %v842_v3 }
  0x6b   : > { %654 = vmatprep.subr.bf16.mxu1 %v841_v2 }
  0x6e   : > { %655 = vmatpush3.bf16.msra.mxu1 %v842_v3 }
  0x71   : > { %638 = vmatmul.mubr.f32.vlgmr.msra.gmra.mrb[0].mxu1 %v377_v12 }
 0x128   : > { %v298_v13 = vpop.f32.mrb[0].mxu0 }
 0x129   : > { %v302_v14 = vmul.f32 %v298_v13, %v298_v13  ;;  %v599_v15 = vpop.f32.mrb[1].mxu0 }
 0x12b   : > { %603 = vmatmul.mubr.msk.f32.vlgmr.msra.gmra.mrb[2].mxu0 %vm303_vm4, %v302_v14 }
 0x144   : > { %v444_v16 = vpop.f32.mrb[0].mxu1 }
 0x145   : > { %v639_v17 = vpop.f32.mrb[1].mxu1 }
 0x1fe   : > { %v373_v18 = vpop.f32.mrb[2].mxu0 }
 0x1ff   : > { %v448_v19 = vsub.f32 %v373_v18, %v444_v16  ;;  %v604_v20 = vpop.f32.mrb[3].mxu0 }
 0x201   : > { %450 = vst.msk [vmem:[%s218_s4] sm:$0xff] %vm449_vm5, %v448_v19 }
 0x202 PF: > { %s18_s14 = sadd.s32 1, %s835_s14   ;;  %s1046_s9 = smov %s819_s10 }
 0x203   : > { %p15_p9 = scmp.ge.s32.totalorder %s18_s14, 4   ;;  %s1047_s10 = smov %s823_s11 }
 0x204   : > { %s1048_s11 = smov %s908_s21  ;;  %s1049_s12 = smov %s831_s13 }
 0x205   : > { %s1050_s13 = smov %s1052_s16  ;;  %17 = sbr.rel (!%p15_p9) target bundleno = 6 (0x6), region = 81 }
 0x20c   :  { %476 = vsyncpa [#allocation3], 1 }
 0x20d   :  { %478 = vsyncpa [#allocation3 + $0x1], 1 }
 0x20e   :  { %479 = vsyncpa [#allocation5], 1 }
 0x20f   :  { %481 = vsyncpa [#allocation5 + $0x1], 1 }

</bundles_post_ra>
